<compile_context>
chip_gen: v7x
topology: tpu7x:2x2x1
jax: 0.10.0
libtpu: 0.0.40
codegen_flags: <defaults>
</compile_context>

<pallas_src>
import jax
import jax.numpy as jnp
from jax.experimental import pallas as pl
from jax.experimental.pallas import tpu as pltpu

HIDDEN = 128   # fc1/fc2 width from the PyTorch module


def _softplus(x):
    # PyTorch F.softplus (beta=1, threshold=20): linear above 20 for stability.
    return jnp.where(x > 20.0, x, jnp.log1p(jnp.exp(jnp.minimum(x, 20.0))))


def _actor_kernel(x_ref, w1_ref, b1_ref, w2_ref, b2_ref,
                  wmu_ref, bmu_ref, wsig_ref, bsig_ref,
                  mu_ref, sigma_ref):
    # In-kernel cast of the input tile to bf16 for the MXU (f32 accumulation).
    xb = x_ref[...].astype(jnp.bfloat16)

    # fc1 + relu
    h1 = jnp.dot(xb, w1_ref[...],
                 preferred_element_type=jnp.float32) + b1_ref[...]
    h1 = jnp.maximum(h1, 0.0).astype(jnp.bfloat16)

    # fc2 + relu
    h2 = jnp.dot(h1, w2_ref[...],
                 preferred_element_type=jnp.float32) + b2_ref[...]
    h2 = jnp.maximum(h2, 0.0).astype(jnp.bfloat16)

    # mu head: 2 * tanh(.)
    mu = 2.0 * jnp.tanh(jnp.dot(h2, wmu_ref[...],
                                preferred_element_type=jnp.float32) + bmu_ref[...])
    # sigma head: softplus(.)
    sg = _softplus(jnp.dot(h2, wsig_ref[...],
                           preferred_element_type=jnp.float32) + bsig_ref[...])

    mu_ref[...] = mu.astype(mu_ref.dtype)
    sigma_ref[...] = sg.astype(sigma_ref.dtype)


def prepare_params(params):
    """One-time conversion of f32 (in, out)-layout params into kernel form:
    bf16 weights for the MXU, f32 biases for the epilogue."""
    return {
        "w1":   params["w1"].astype(jnp.bfloat16),
        "b1":   params["b1"].astype(jnp.float32),
        "w2":   params["w2"].astype(jnp.bfloat16),
        "b2":   params["b2"].astype(jnp.float32),
        "wmu":  params["wmu"].astype(jnp.bfloat16),
        "bmu":  params["bmu"].astype(jnp.float32),
        "wsig": params["wsig"].astype(jnp.bfloat16),
        "bsig": params["bsig"].astype(jnp.float32),
        "action_size": params["wmu"].shape[1],
    }


def _round_up(x, m):
    return ((x + m - 1) // m) * m


def actor_continuous_forward(x, kp, *, block_rows=4096, out_dtype=jnp.float32):
    """x: (B, state_size) float32. kp: output of prepare_params().
    Returns (mu, sigma), each (B, action_size) in out_dtype."""
    B, S = x.shape
    A = kp["action_size"]

    # Batch tile: aim for >= 4 grid steps (so v7x's 2 TCs both get work via the
    # "parallel" axis) while staying a multiple of 8 and <= block_rows.
    if B <= 8:
        TB = B                                   # full dim -> always legal
    else:
        TB = min(block_rows, max(8, _round_up(pl.cdiv(B, 4), 8)))
        TB = min(TB, _round_up(B, 8))
    grid = (pl.cdiv(B, TB),)

    # Advisory cost estimate so XLA overlaps this small call with neighbours.
    flops = 2 * B * (S * HIDDEN + HIDDEN * HIDDEN + 2 * HIDDEN * A)
    transcendentals = 3 * B * A                  # tanh + exp + log1p per head elem
    bytes_accessed = (B * S * 4                  # x (f32 in)
                      + (S + HIDDEN + 2 * A) * HIDDEN * 2   # bf16 weights
                      + (2 * HIDDEN + 2 * A) * 4            # f32 biases
                      + 2 * B * A * jnp.dtype(out_dtype).itemsize)  # mu + sigma

    mu, sigma = pl.pallas_call(
        _actor_kernel,
        out_shape=(jax.ShapeDtypeStruct((B, A), out_dtype),
                   jax.ShapeDtypeStruct((B, A), out_dtype)),
        grid=grid,
        in_specs=[
            pl.BlockSpec((TB, S), lambda i: (i, 0)),           # x: tiled on batch
            pl.BlockSpec((S, HIDDEN), lambda i: (0, 0)),        # w1: resident
            pl.BlockSpec((1, HIDDEN), lambda i: (0, 0)),         # b1
            pl.BlockSpec((HIDDEN, HIDDEN), lambda i: (0, 0)),    # w2
            pl.BlockSpec((1, HIDDEN), lambda i: (0, 0)),         # b2
            pl.BlockSpec((HIDDEN, A), lambda i: (0, 0)),         # wmu
            pl.BlockSpec((1, A), lambda i: (0, 0)),              # bmu
            pl.BlockSpec((HIDDEN, A), lambda i: (0, 0)),         # wsig
            pl.BlockSpec((1, A), lambda i: (0, 0)),              # bsig
        ],
        out_specs=(pl.BlockSpec((TB, A), lambda i: (i, 0)),      # mu
                   pl.BlockSpec((TB, A), lambda i: (i, 0))),     # sigma
        compiler_params=pltpu.CompilerParams(
            dimension_semantics=("parallel",),
            vmem_limit_bytes=32 << 20),
        cost_estimate=pl.CostEstimate(flops=flops,
                                      transcendentals=transcendentals,
                                      bytes_accessed=bytes_accessed),
    )(x, kp["w1"], kp["b1"], kp["w2"], kp["b2"],
      kp["wmu"], kp["bmu"], kp["wsig"], kp["bsig"])

    return mu, sigma


def init_params(key, state_size, action_size, hidden=HIDDEN):
    """Deterministic synthetic init. Weights stored already transposed to (in, out)."""
    ks = jax.random.split(key, 8)

    def uniform(k, shape, fan_in):
        bound = 1.0 / jnp.sqrt(fan_in)
        return jax.random.uniform(k, shape, jnp.float32, -bound, bound)

    return {
        "w1":   uniform(ks[0], (state_size, hidden), state_size),
        "b1":   uniform(ks[1], (1, hidden), state_size),
        "w2":   uniform(ks[2], (hidden, hidden), hidden),
        "b2":   uniform(ks[3], (1, hidden), hidden),
        "wmu":  uniform(ks[4], (hidden, action_size), hidden),
        "bmu":  uniform(ks[5], (1, action_size), hidden),
        "wsig": uniform(ks[6], (hidden, action_size), hidden),
        "bsig": uniform(ks[7], (1, action_size), hidden),
    }


def reference_forward_f32(x, p):
    """Pure f32 reference (PyTorch-like semantics)."""
    h1 = jnp.maximum(x @ p["w1"] + p["b1"], 0.0)
    h2 = jnp.maximum(h1 @ p["w2"] + p["b2"], 0.0)
    mu = 2.0 * jnp.tanh(h2 @ p["wmu"] + p["bmu"])
    sigma = jax.nn.softplus(h2 @ p["wsig"] + p["bsig"])
    return mu, sigma


def reference_forward_bf16(x, p):
    """Mirrors the kernel's bf16-input / f32-accumulate math for a tight check."""
    xb = x.astype(jnp.bfloat16)
    h1 = jnp.dot(xb, p["w1"].astype(jnp.bfloat16),
                 preferred_element_type=jnp.float32) + p["b1"]
    h1 = jnp.maximum(h1, 0.0).astype(jnp.bfloat16)
    h2 = jnp.dot(h1, p["w2"].astype(jnp.bfloat16),
                 preferred_element_type=jnp.float32) + p["b2"]
    h2 = jnp.maximum(h2, 0.0).astype(jnp.bfloat16)
    mu = 2.0 * jnp.tanh(jnp.dot(h2, p["wmu"].astype(jnp.bfloat16),
                                preferred_element_type=jnp.float32) + p["bmu"])
    sigma = _softplus(jnp.dot(h2, p["wsig"].astype(jnp.bfloat16),
                              preferred_element_type=jnp.float32) + p["bsig"])
    return mu, sigma


if __name__ == "__main__":
    key = jax.random.PRNGKey(0)
    k_x, k_p = jax.random.split(key)

    batch, state_size, action_size = 8, 32, 4
    x = jax.random.normal(k_x, (batch, state_size), jnp.float32)
    params = init_params(k_p, state_size, action_size)
    kparams = prepare_params(params)

    mu, sigma = actor_continuous_forward(x, kparams)
    jax.block_until_ready((mu, sigma))

    assert mu.shape == (batch, action_size) and sigma.shape == (batch, action_size)

    # Tight check against a reference doing the exact same bf16-in / f32-acc math.
    mu_b, sigma_b = reference_forward_bf16(x, params)
    assert jnp.allclose(mu, mu_b, atol=1e-4, rtol=1e-4)
    assert jnp.allclose(sigma, sigma_b, atol=1e-4, rtol=1e-4)

    # Loose check against the pure-f32 PyTorch-semantics reference
    # (bounded drift from the bf16 MXU-input cast).
    mu_f, sigma_f = reference_forward_f32(x, params)
    assert jnp.allclose(mu, mu_f, atol=5e-2, rtol=5e-2)
    assert jnp.allclose(sigma, sigma_f, atol=5e-2, rtol=5e-2)
    assert bool(jnp.all(sigma > 0.0))

    # Also exercise a multi-tile batch (partial last tile) to cover the grid path.
    big_b = 100
    xb = jax.random.normal(k_x, (big_b, state_size), jnp.float32)
    mu2, sigma2 = actor_continuous_forward(xb, kparams, block_rows=32)
    jax.block_until_ready((mu2, sigma2))
    mu2_b, sigma2_b = reference_forward_bf16(xb, params)
    assert jnp.allclose(mu2, mu2_b, atol=1e-4, rtol=1e-4)
    assert jnp.allclose(sigma2, sigma2_b, atol=1e-4, rtol=1e-4)

    # TODO(synk): `act()` uses torch.distributions.Normal sampling + log_prob;
    # that is host-side glue in the original module, not part of the kernel hot path.

    print("KERNEL_OK")
</pallas_src>

<mosaic_0001>
module attributes {stable_mosaic.version = 11 : i64} {
  func.func @_actor_kernel(%arg0: i32, %arg1: memref<8x32xf32, #tpu.memory_space<vmem>>, %arg2: memref<32x128xbf16, #tpu.memory_space<vmem>>, %arg3: memref<1x128xf32, #tpu.memory_space<vmem>>, %arg4: memref<128x128xbf16, #tpu.memory_space<vmem>>, %arg5: memref<1x128xf32, #tpu.memory_space<vmem>>, %arg6: memref<128x4xbf16, #tpu.memory_space<vmem>>, %arg7: memref<1x4xf32, #tpu.memory_space<vmem>>, %arg8: memref<128x4xbf16, #tpu.memory_space<vmem>>, %arg9: memref<1x4xf32, #tpu.memory_space<vmem>>, %arg10: memref<8x4xf32, #tpu.memory_space<vmem>>, %arg11: memref<8x4xf32, #tpu.memory_space<vmem>>) attributes {dimension_semantics = [#tpu.dimension_semantics<parallel>], iteration_bounds = array<i64: 1>, scalar_prefetch = 0 : i64, scratch_operands = 0 : i64, tpu.core_type = #tpu.core_type<tc>, window_params = [{transform_indices = @transform_0, window_bounds = array<i64: 8, 32>}, {pipeline_mode = #tpu.pipeline_mode<synchronous>, transform_indices = @transform_1, window_bounds = array<i64: 32, 128>}, {pipeline_mode = #tpu.pipeline_mode<synchronous>, transform_indices = @transform_2, window_bounds = array<i64: 1, 128>}, {pipeline_mode = #tpu.pipeline_mode<synchronous>, transform_indices = @transform_3, window_bounds = array<i64: 128, 128>}, {pipeline_mode = #tpu.pipeline_mode<synchronous>, transform_indices = @transform_4, window_bounds = array<i64: 1, 128>}, {pipeline_mode = #tpu.pipeline_mode<synchronous>, transform_indices = @transform_5, window_bounds = array<i64: 128, 4>}, {pipeline_mode = #tpu.pipeline_mode<synchronous>, transform_indices = @transform_6, window_bounds = array<i64: 1, 4>}, {pipeline_mode = #tpu.pipeline_mode<synchronous>, transform_indices = @transform_7, window_bounds = array<i64: 128, 4>}, {pipeline_mode = #tpu.pipeline_mode<synchronous>, transform_indices = @transform_8, window_bounds = array<i64: 1, 4>}, {transform_indices = @transform_9, window_bounds = array<i64: 8, 4>}, {transform_indices = @transform_10, window_bounds = array<i64: 8, 4>}]} {
    %c0 = arith.constant 0 : index
    %c0_0 = arith.constant 0 : index
    %0 = vector.load %arg1[%c0, %c0_0] : memref<8x32xf32, #tpu.memory_space<vmem>>, vector<8x32xf32>
    %1 = arith.truncf %0 : vector<8x32xf32> to vector<8x32xbf16>
    %c0_1 = arith.constant 0 : index
    %c0_2 = arith.constant 0 : index
    %2 = vector.load %arg2[%c0_1, %c0_2] : memref<32x128xbf16, #tpu.memory_space<vmem>>, vector<32x128xbf16>
    %cst = arith.constant dense<0.000000e+00> : vector<8x128xf32>
    %3 = tpu.matmul %1, %2, %cst {dimension_numbers = #tpu.dot_dimension_numbers<[1], [0], [0], [1], [0, 0, 1, 1], [], []>} : vector<8x32xbf16>, vector<32x128xbf16>, vector<8x128xf32> -> vector<8x128xf32>
    %c0_3 = arith.constant 0 : index
    %c0_4 = arith.constant 0 : index
    %4 = vector.load %arg3[%c0_3, %c0_4] : memref<1x128xf32, #tpu.memory_space<vmem>>, vector<1x128xf32>
    %5 = vector.broadcast %4 : vector<1x128xf32> to vector<8x128xf32>
    %6 = arith.addf %3, %5 : vector<8x128xf32>
    %cst_5 = arith.constant 0.000000e+00 : f32
    %7 = vector.broadcast %cst_5 : f32 to vector<8x128xf32>
    %8 = arith.maximumf %6, %7 : vector<8x128xf32>
    %9 = arith.truncf %8 : vector<8x128xf32> to vector<8x128xbf16>
    %c0_6 = arith.constant 0 : index
    %c0_7 = arith.constant 0 : index
    %10 = vector.load %arg4[%c0_6, %c0_7] : memref<128x128xbf16, #tpu.memory_space<vmem>>, vector<128x128xbf16>
    %cst_8 = arith.constant dense<0.000000e+00> : vector<8x128xf32>
    %11 = tpu.matmul %9, %10, %cst_8 {dimension_numbers = #tpu.dot_dimension_numbers<[1], [0], [0], [1], [0, 0, 1, 1], [], []>} : vector<8x128xbf16>, vector<128x128xbf16>, vector<8x128xf32> -> vector<8x128xf32>
    %c0_9 = arith.constant 0 : index
    %c0_10 = arith.constant 0 : index
    %12 = vector.load %arg5[%c0_9, %c0_10] : memref<1x128xf32, #tpu.memory_space<vmem>>, vector<1x128xf32>
    %13 = vector.broadcast %12 : vector<1x128xf32> to vector<8x128xf32>
    %14 = arith.addf %11, %13 : vector<8x128xf32>
    %cst_11 = arith.constant 0.000000e+00 : f32
    %15 = vector.broadcast %cst_11 : f32 to vector<8x128xf32>
    %16 = arith.maximumf %14, %15 : vector<8x128xf32>
    %17 = arith.truncf %16 : vector<8x128xf32> to vector<8x128xbf16>
    %c0_12 = arith.constant 0 : index
    %c0_13 = arith.constant 0 : index
    %18 = vector.load %arg6[%c0_12, %c0_13] : memref<128x4xbf16, #tpu.memory_space<vmem>>, vector<128x4xbf16>
    %cst_14 = arith.constant dense<0.000000e+00> : vector<8x4xf32>
    %19 = tpu.matmul %17, %18, %cst_14 {dimension_numbers = #tpu.dot_dimension_numbers<[1], [0], [0], [1], [0, 0, 1, 1], [], []>} : vector<8x128xbf16>, vector<128x4xbf16>, vector<8x4xf32> -> vector<8x4xf32>
    %c0_15 = arith.constant 0 : index
    %c0_16 = arith.constant 0 : index
    %20 = vector.load %arg7[%c0_15, %c0_16] : memref<1x4xf32, #tpu.memory_space<vmem>>, vector<1x4xf32>
    %21 = vector.broadcast %20 : vector<1x4xf32> to vector<8x4xf32>
    %22 = arith.addf %19, %21 : vector<8x4xf32>
    %23 = math.tanh %22 : vector<8x4xf32>
    %cst_17 = arith.constant 2.000000e+00 : f32
    %24 = vector.broadcast %cst_17 : f32 to vector<8x4xf32>
    %25 = arith.mulf %24, %23 : vector<8x4xf32>
    %c0_18 = arith.constant 0 : index
    %c0_19 = arith.constant 0 : index
    %26 = vector.load %arg8[%c0_18, %c0_19] : memref<128x4xbf16, #tpu.memory_space<vmem>>, vector<128x4xbf16>
    %cst_20 = arith.constant dense<0.000000e+00> : vector<8x4xf32>
    %27 = tpu.matmul %17, %26, %cst_20 {dimension_numbers = #tpu.dot_dimension_numbers<[1], [0], [0], [1], [0, 0, 1, 1], [], []>} : vector<8x128xbf16>, vector<128x4xbf16>, vector<8x4xf32> -> vector<8x4xf32>
    %c0_21 = arith.constant 0 : index
    %c0_22 = arith.constant 0 : index
    %28 = vector.load %arg9[%c0_21, %c0_22] : memref<1x4xf32, #tpu.memory_space<vmem>>, vector<1x4xf32>
    %29 = vector.broadcast %28 : vector<1x4xf32> to vector<8x4xf32>
    %30 = arith.addf %27, %29 : vector<8x4xf32>
    %cst_23 = arith.constant 2.000000e+01 : f32
    %31 = vector.broadcast %cst_23 : f32 to vector<8x4xf32>
    %32 = arith.cmpf ogt, %30, %31 : vector<8x4xf32>
    %cst_24 = arith.constant 2.000000e+01 : f32
    %33 = vector.broadcast %cst_24 : f32 to vector<8x4xf32>
    %34 = arith.minimumf %30, %33 : vector<8x4xf32>
    %35 = math.exp %34 : vector<8x4xf32>
    %36 = math.log1p %35 : vector<8x4xf32>
    %37 = arith.select %32, %30, %36 : vector<8x4xi1>, vector<8x4xf32>
    %c0_25 = arith.constant 0 : index
    %c0_26 = arith.constant 0 : index
    %38 = vector.load %arg10[%c0_25, %c0_26] : memref<8x4xf32, #tpu.memory_space<vmem>>, vector<8x4xf32>
    tpu.vector_store %arg10[%c0_25, %c0_26], %25 {strides = array<i32>} : memref<8x4xf32, #tpu.memory_space<vmem>>, vector<8x4xf32>,
    %c0_27 = arith.constant 0 : index
    %c0_28 = arith.constant 0 : index
    %39 = vector.load %arg11[%c0_27, %c0_28] : memref<8x4xf32, #tpu.memory_space<vmem>>, vector<8x4xf32>
    tpu.vector_store %arg11[%c0_27, %c0_28], %37 {strides = array<i32>} : memref<8x4xf32, #tpu.memory_space<vmem>>, vector<8x4xf32>,
    return
  }
  func.func @transform_0(%arg0: i32) -> (i32, i32) {
    %c0_i32 = arith.constant 0 : i32
    %c0_i32_0 = arith.constant 0 : i32
    return %arg0, %c0_i32 : i32, i32
  }
  func.func @transform_1(%arg0: i32) -> (i32, i32) {
    %c0_i32 = arith.constant 0 : i32
    %c0_i32_0 = arith.constant 0 : i32
    %c0_i32_1 = arith.constant 0 : i32
    return %c0_i32, %c0_i32_0 : i32, i32
  }
  func.func @transform_2(%arg0: i32) -> (i32, i32) {
    %c0_i32 = arith.constant 0 : i32
    %c0_i32_0 = arith.constant 0 : i32
    %c0_i32_1 = arith.constant 0 : i32
    return %c0_i32, %c0_i32_0 : i32, i32
  }
  func.func @transform_3(%arg0: i32) -> (i32, i32) {
    %c0_i32 = arith.constant 0 : i32
    %c0_i32_0 = arith.constant 0 : i32
    %c0_i32_1 = arith.constant 0 : i32
    return %c0_i32, %c0_i32_0 : i32, i32
  }
  func.func @transform_4(%arg0: i32) -> (i32, i32) {
    %c0_i32 = arith.constant 0 : i32
    %c0_i32_0 = arith.constant 0 : i32
    %c0_i32_1 = arith.constant 0 : i32
    return %c0_i32, %c0_i32_0 : i32, i32
  }
  func.func @transform_5(%arg0: i32) -> (i32, i32) {
    %c0_i32 = arith.constant 0 : i32
    %c0_i32_0 = arith.constant 0 : i32
    %c0_i32_1 = arith.constant 0 : i32
    return %c0_i32, %c0_i32_0 : i32, i32
  }
  func.func @transform_6(%arg0: i32) -> (i32, i32) {
    %c0_i32 = arith.constant 0 : i32
    %c0_i32_0 = arith.constant 0 : i32
    %c0_i32_1 = arith.constant 0 : i32
    return %c0_i32, %c0_i32_0 : i32, i32
  }
  func.func @transform_7(%arg0: i32) -> (i32, i32) {
    %c0_i32 = arith.constant 0 : i32
    %c0_i32_0 = arith.constant 0 : i32
    %c0_i32_1 = arith.constant 0 : i32
    return %c0_i32, %c0_i32_0 : i32, i32
  }
  func.func @transform_8(%arg0: i32) -> (i32, i32) {
    %c0_i32 = arith.constant 0 : i32
    %c0_i32_0 = arith.constant 0 : i32
    %c0_i32_1 = arith.constant 0 : i32
    return %c0_i32, %c0_i32_0 : i32, i32
  }
  func.func @transform_9(%arg0: i32) -> (i32, i32) {
    %c0_i32 = arith.constant 0 : i32
    %c0_i32_0 = arith.constant 0 : i32
    return %arg0, %c0_i32 : i32, i32
  }
  func.func @transform_10(%arg0: i32) -> (i32, i32) {
    %c0_i32 = arith.constant 0 : i32
    %c0_i32_0 = arith.constant 0 : i32
    return %arg0, %c0_i32 : i32, i32
  }
}

</mosaic_0001>

<bundles_post_ra>
// kernel: tpu_custom_call.1
= control target key start
LH: loop header
LB: loop body
LE: loop exit
PB: predicated region body
PF: predicated region fallthrough
CT: control target
= control target key end

     0   :  { %v631_v0 = vmov 0.0   ;;  %vm632_vm0 = vmmov 0   ;;  %vm60_vm1 = vcmask 261120   ;;  %vm457_vm2 = vcmask 31744   ;;  %s823_s1 = inlined_call_operand.vmem [shape: bf16[32,128], index: 1, kind: input, shape index: {}]   ;;  %s824_s0 = inlined_call_operand.vmem [shape: f32[8,32], index: 0, kind: input, shape index: {}]   ;;  %s825_s3 = inlined_call_operand.vmem [shape: bf16[128,128], index: 3, kind: input, shape index: {}]   ;;  %s826_s5 = inlined_call_operand.vmem [shape: bf16[128,4], index: 5, kind: input, shape index: {}]   ;;  %s827_s7 = inlined_call_operand.vmem [shape: bf16[128,4], index: 7, kind: input, shape index: {}]   ;;  %s828_s2 = inlined_call_operand.vmem [shape: f32[1,128], index: 2, kind: input, shape index: {}]   ;;  %s829_s4 = inlined_call_operand.vmem [shape: f32[1,128], index: 4, kind: input, shape index: {}]   ;;  %s830_s6 = inlined_call_operand.vmem [shape: f32[1,4], index: 6, kind: input, shape index: {}]   ;;  %s831_s8 = inlined_call_operand.vmem [shape: f32[1,4], index: 8, kind: input, shape index: {}]   ;;  %s832_s9 = inlined_call_operand.vmem [shape: f32[8,4], index: 9, kind: output, shape index: {0}]   ;;  %s833_s10 = inlined_call_operand.vmem [shape: f32[8,4], index: 10, kind: output, shape index: {1}]  }
   0x1   :  { %529 = vmatprep.subr.bf16.mxu0 %v631_v0  ;;  %v599_v1 = vld [vmem:[%s823_s1] sm:$0xff]   ;;  %533 = vmatprep.mubr.msk.bf16.mxu0 %vm632_vm0, %v631_v0  ;;  %v600_v2 = vld [vmem:[%s823_s1 + $0x8] sm:$0xff]   ;;  %v603_v7 = vld [vmem:[%s825_s3 + $0x10] sm:$0xff]  }
   0x2   :  { %537 = vmatprep.subr.bf16.mxu1 %v631_v0  ;;  %553 = vmatprep.mubr.msk.bf16.mxu1 %vm632_vm0, %v631_v0  ;;  %v35_v3 = vld [vmem:[%s824_s0] sm:$0xff]  ;;  %v602_v6 = vld [vmem:[%s825_s3 + $0x8] sm:$0xff]   ;;  %v604_v8 = vld [vmem:[%s825_s3 + $0x18] sm:$0xff]  }
   0x3   :  { %530 = vmatpush3.bf16.msra.mxu0 %v599_v1  ;;  %v601_v4 = vld [vmem:[%s825_s3] sm:$0xff]   ;;  %v36_v5 = vpack.c.bf16 %v35_v3, %v35_v3  ;;  %v606_v10 = vld [vmem:[%s825_s3 + $0x28] sm:$0xff]   ;;  %v607_v11 = vld [vmem:[%s825_s3 + $0x30] sm:$0xff]  }
   0x4   :  { %531 = vmatprep.subr.bf16.mxu0 %v631_v0  ;;  %538 = vmatpush3.bf16.msra.mxu1 %v601_v4  ;;  %v605_v9 = vld [vmem:[%s825_s3 + $0x20] sm:$0xff]   ;;  %v608_v12 = vld [vmem:[%s825_s3 + $0x38] sm:$0xff]   ;;  %v611_v14 = vld [vmem:[%s826_s5 + $0x8] sm:$0xff]  }
   0x5   :  { %539 = vmatprep.subr.bf16.mxu1 %v631_v0  ;;  %v609_v13 = vld [vmem:[%s826_s5] sm:$0xff]   ;;  %v613_v15 = vld [vmem:[%s826_s5 + $0x10] sm:$0xff]   ;;  %v615_v16 = vld [vmem:[%s826_s5 + $0x18] sm:$0xff]  }
   0x6   :  { %v617_v17 = vld [vmem:[%s826_s5 + $0x20] sm:$0xff]   ;;  %v619_v18 = vld [vmem:[%s826_s5 + $0x28] sm:$0xff]   ;;  %v614_v29 = vld [vmem:[%s827_s7 + $0x10] sm:$0xff]  }
   0x7   :  { %532 = vmatpush3.bf16.msra.mxu0 %v600_v2  ;;  %v468_v19 = vld [vmem:[%s828_s2] ss:$0 sm:$0xff]  ;;  %v612_v28 = vld [vmem:[%s827_s7 + $0x8] sm:$0xff]   ;;  %v616_v30 = vld [vmem:[%s827_s7 + $0x18] sm:$0xff]  }
   0x8   :  { %557 = vmatprep.subr.bf16.mxu0 %v631_v0  ;;  %540 = vmatpush3.bf16.msra.mxu1 %v602_v6  ;;  %v610_v26 = vld [vmem:[%s827_s7] sm:$0xff]   ;;  %v620_v32 = vld [vmem:[%s827_s7 + $0x28] sm:$0xff]   ;;  %v621_v33 = vld [vmem:[%s826_s5 + $0x30] sm:$0xff]  }
   0x9   :  { %541 = vmatprep.subr.bf16.mxu1 %v631_v0  ;;  %v618_v31 = vld [vmem:[%s827_s7 + $0x20] sm:$0xff]   ;;  %v622_v34 = vld [vmem:[%s827_s7 + $0x30] sm:$0xff]   ;;  %v623_v35 = vld [vmem:[%s826_s5 + $0x38] sm:$0xff]  }
   0xa   :  { %534 = vmatmul.mubr.msk.bf16.vlgmr.msra.gmra.mrb[0].mxu0 %vm60_vm1, %v36_v5  ;;  %v624_v36 = vld [vmem:[%s827_s7 + $0x38] sm:$0xff]   ;;  %v472_v37 = vld [vmem:[%s829_s4] ss:$0 sm:$0xff] }
   0xb   :  { %573 = vmatprep.mubr.msk.bf16.mxu0 %vm632_vm0, %v631_v0  ;;  %558 = vmatpush3.bf16.msra.mxu0 %v609_v13  ;;  %v481_v45 = vld [vmem:[%s830_s6] ss:$0 sm:$0xff] }
   0xc   :  { %542 = vmatpush3.bf16.msra.mxu1 %v603_v7  ;;  %559 = vmatprep.subr.bf16.mxu0 %v631_v0  ;;  %v490_v46 = vld [vmem:[%s831_s8] ss:$0 sm:$0xff] }
   0xd   :  { %543 = vmatprep.subr.bf16.mxu1 %v631_v0 }
   0xf   :  { %560 = vmatpush3.bf16.msra.mxu0 %v611_v14 }
  0x10   :  { %544 = vmatpush3.bf16.msra.mxu1 %v604_v8  ;;  %561 = vmatprep.subr.bf16.mxu0 %v631_v0 }
  0x11   :  { %545 = vmatprep.subr.bf16.mxu1 %v631_v0 }
  0x13   :  { %562 = vmatpush3.bf16.msra.mxu0 %v613_v15 }
  0x14   :  { %546 = vmatpush3.bf16.msra.mxu1 %v605_v9  ;;  %563 = vmatprep.subr.bf16.mxu0 %v631_v0 }
  0x15   :  { %547 = vmatprep.subr.bf16.mxu1 %v631_v0 }
  0x17   :  { %564 = vmatpush3.bf16.msra.mxu0 %v615_v16 }
  0x18   :  { %548 = vmatpush3.bf16.msra.mxu1 %v606_v10  ;;  %565 = vmatprep.subr.bf16.mxu0 %v631_v0 }
  0x19   :  { %549 = vmatprep.subr.bf16.mxu1 %v631_v0 }
  0x1b   :  { %566 = vmatpush3.bf16.msra.mxu0 %v617_v17 }
  0x1c   :  { %550 = vmatpush3.bf16.msra.mxu1 %v607_v11  ;;  %567 = vmatprep.subr.bf16.mxu0 %v631_v0 }
  0x1d   :  { %551 = vmatprep.subr.bf16.mxu1 %v631_v0 }
  0x1f   :  { %568 = vmatpush3.bf16.msra.mxu0 %v619_v18 }
  0x20   :  { %552 = vmatpush3.bf16.msra.mxu1 %v608_v12  ;;  %569 = vmatprep.subr.bf16.mxu0 %v631_v0 }
  0x21   :  { %577 = vmatprep.subr.bf16.mxu1 %v631_v0 }
  0x23   :  { %570 = vmatpush3.bf16.msra.mxu0 %v621_v33 }
  0x24   :  { %571 = vmatprep.subr.bf16.mxu0 %v631_v0 }
  0x27   :  { %572 = vmatpush3.bf16.msra.mxu0 %v623_v35 }
  0xdd   :  { %v98_v20 = vpop.f32.mrb[0].mxu0 }
  0xde   :  { %v99_v21 = vadd.f32 %v468_v19, %v98_v20  ;;  %v535_v22 = vpop.f32.mrb[1].mxu0 }
  0xdf   :  { %v101_v23 = vpop.f32.mrb[2].mxu0 }
  0xe0   :  { %v104_v24 = vmax.f32 %v99_v21, 0.0  ;;  %v536_v25 = vpop.f32.mrb[3].mxu0 }
  0xe2   :  { %v105_v27 = vpack.c.bf16 %v104_v24, %v104_v24 }
  0xe4   :  { %554 = vmatmul.mubr.bf16.vlgmr.msra.gmra.mrb[0].mxu1 %v105_v27 }
  0xe5   :  { %578 = vmatpush3.bf16.msra.mxu1 %v610_v26  ;;  %593 = vmatprep.mubr.msk.bf16.mxu1 %vm632_vm0, %v631_v0 }
  0xe6   :  { %579 = vmatprep.subr.bf16.mxu1 %v631_v0 }
  0xe9   :  { %580 = vmatpush3.bf16.msra.mxu1 %v612_v28 }
  0xea   :  { %581 = vmatprep.subr.bf16.mxu1 %v631_v0 }
  0xed   :  { %582 = vmatpush3.bf16.msra.mxu1 %v614_v29 }
  0xee   :  { %583 = vmatprep.subr.bf16.mxu1 %v631_v0 }
  0xf1   :  { %584 = vmatpush3.bf16.msra.mxu1 %v616_v30 }
  0xf2   :  { %585 = vmatprep.subr.bf16.mxu1 %v631_v0 }
  0xf5   :  { %586 = vmatpush3.bf16.msra.mxu1 %v618_v31 }
  0xf6   :  { %587 = vmatprep.subr.bf16.mxu1 %v631_v0 }
  0xf9   :  { %588 = vmatpush3.bf16.msra.mxu1 %v620_v32 }
  0xfa   :  { %589 = vmatprep.subr.bf16.mxu1 %v631_v0 }
  0xfd   :  { %590 = vmatpush3.bf16.msra.mxu1 %v622_v34 }
  0xfe   :  { %591 = vmatprep.subr.bf16.mxu1 %v631_v0 }
 0x101   :  { %592 = vmatpush3.bf16.msra.mxu1 %v624_v36 }
 0x1b7   :  { %v211_v38 = vpop.f32.mrb[0].mxu1 }
 0x1b8   :  { %v212_v39 = vadd.f32 %v472_v37, %v211_v38  ;;  %v555_v40 = vpop.f32.mrb[1].mxu1 }
 0x1b9   :  { %v214_v41 = vpop.f32.mrb[2].mxu1 }
 0x1ba   :  { %v217_v42 = vmax.f32 %v212_v39, 0.0  ;;  %v556_v43 = vpop.f32.mrb[3].mxu1 }
 0x1bc   :  { %v218_v44 = vpack.c.bf16 %v217_v42, %v217_v42 }
 0x1be   :  { %574 = vmatmul.mubr.bf16.vlgmr.msra.gmra.mrb[4].mxu0 %v218_v44  ;;  %594 = vmatmul.mubr.bf16.vlgmr.msra.gmra.mrb[4].mxu1 %v218_v44 }
 0x291   :  { %v324_v47 = vpop.f32.mrb[4].mxu0  ;;  %v437_v48 = vpop.f32.mrb[4].mxu1 }
 0x292   :  { %v325_v49 = vadd.f32 %v481_v45, %v324_v47  ;;  %v438_v50 = vadd.f32 %v490_v46, %v437_v48  ;;  %v575_v51 = vpop.f32.mrb[5].mxu0  ;;  %v595_v52 = vpop.f32.mrb[5].mxu1 }
 0x293   :  { %v327_v53 = vpop.f32.mrb[6].mxu0  ;;  %v440_v54 = vpop.f32.mrb[6].mxu1 }
 0x294   :  { %625 = vtanh.f32 %v325_v49  ;;  %v444_v55 = vmin.f32 %v438_v50, 20.0  ;;  %v576_v56 = vpop.f32.mrb[7].mxu0  ;;  %v596_v57 = vpop.f32.mrb[7].mxu1  ;;  %vm443_vm4 = vcmp.gt.f32.partialorder %v438_v50, 20.0 }
 0x296   :  { %v445_v58 = vmul.f32 1.442695, %v444_v55 }
 0x298   :  { %627 = vpow2.f32 %v445_v58 }
 0x29e   :  { %v626_v59 = vpop.eup %625 }
 0x29f   :  { %v331_v60 = vmul.f32 2.0, %v626_v59 }
 0x2a1   :  { %458 = vst.msk [vmem:[%s832_s9] sm:$0xff] %vm457_vm2, %v331_v60 }
 0x2a2   :  { %v628_v61 = vpop.eup %627 }
 0x2a3   :  { %v447_v62 = vadd.f32 1.0, %v628_v61  ;;  %v450_v63 = vmul.f32 -0.5, %v628_v61  ;;  %v453_v1 = vand.u32 2147483647, %v628_v61 }
 0x2a5   :  { %629 = vlog2.f32 %v447_v62  ;;  %v451_v0 = vadd.f32 1.0, %v450_v63  ;;  %vm454_vm3 = vcmp.lt.f32.partialorder %v453_v1, 0.0004427343 }
 0x2a7   :  { %v452_v4 = vmul.f32 %v628_v61, %v451_v0 }
 0x2af   :  { %v630_v2 = vpop.eup %629 }
 0x2b0   :  { %v449_v3 = vmul.f32 0.6931472, %v630_v2 }
 0x2b2   :  { %v455_v5 = vsel %vm454_vm3, %v452_v4, %v449_v3 }
 0x2b3   :  { %v456_v6 = vsel %vm443_vm4, %v438_v50, %v455_v5 }
 0x2b4   :  { %459 = vst.msk [vmem:[%s833_s10] sm:$0xff] %vm457_vm2, %v456_v6 }

</bundles_post_ra>
